<compile_context>
chip_gen: v6e
topology: v6e:2x2x1
jax: 0.10.0
libtpu: 0.0.40
codegen_flags: <defaults>
</compile_context>

<pallas_src>
import math

import jax
import jax.numpy as jnp
from jax.experimental import pallas as pl
from jax.experimental.pallas import tpu as pltpu


def _sinusoidal_pe(length, d_model, dtype=jnp.float32):
    """Standard PositionalEmbedding(d_model) table, rows 0..length-1."""
    position = jnp.arange(length, dtype=jnp.float32)[:, None]
    div_term = jnp.exp(
        jnp.arange(0, d_model, 2, dtype=jnp.float32) * -(math.log(10000.0) / d_model)
    )
    pe = jnp.zeros((length, d_model), dtype=jnp.float32)
    pe = pe.at[:, 0::2].set(jnp.sin(position * div_term))
    # Slice the cos half defensively so odd d_model does not error
    # (PyTorch's PositionalEmbedding would error; this is a superset).
    pe = pe.at[:, 1::2].set(jnp.cos(position * div_term)[:, : (d_model // 2)])
    return pe.astype(dtype)


def _vmem_budget():
    """Return (block-sizing budget, vmem_limit_bytes), generation-aware."""
    mib = 1024 * 1024
    cap = None
    try:
        cap = getattr(pltpu.get_tpu_info(), "vmem_capacity_bytes", None)
    except Exception:  # pragma: no cover - hardware query best-effort only
        cap = None
    if cap is not None and cap >= 96 * mib:
        # v5e / v6e: 128 MiB physical VMEM per TensorCore.
        return 48 * mib, 96 * mib
    # v7x (64 MiB physical, 32 MiB scoped default) or unknown: stay conservative.
    return 24 * mib, 48 * mib


def _choose_block_series(n_series, num_patches, patch_len, d_model, itemsize,
                         budget_bytes):
    """Series per grid step (TB).

    The flattened x operand is 2-D (n_series*num_patches, patch_len); its block's
    second-to-last dim (TB*num_patches) must be a multiple of 8, so TB must be a
    multiple of `base`.  VMEM accounting includes the 128-lane padding of the
    narrow x tile and counts the constant-index-map inputs (w, pe) at two buffers.
    """
    base = 8 // math.gcd(8, num_patches)

    lane = 128
    dm_lanes = pl.cdiv(d_model, lane) * lane      # last-dim lane padding in VMEM
    plen_lanes = pl.cdiv(patch_len, lane) * lane  # x tile pads to >= 128 lanes

    # Double-buffered, per-series VMEM bytes for the pipelined operands.
    per_series = 2 * itemsize * (
        num_patches * plen_lanes             # x tile
        + (num_patches + 1) * dm_lanes       # out tile
        + dm_lanes                           # glb tile
    )
    # Constant-index-map inputs (w, pe): conservatively count both buffers.
    fixed = 2 * itemsize * (
        pl.cdiv(patch_len, 8) * 8 * dm_lanes
        + pl.cdiv(num_patches, 8) * 8 * dm_lanes
    )
    avail = max(budget_bytes - fixed, per_series * base)
    tb = max(base, (avail // per_series) // base * base)

    # Keep >= ~4 grid steps when the problem is big enough so the DMA pipeline
    # actually overlaps compute (grid of 1 serializes DMA/compute/writeback).
    tb_pipe = max(base, (n_series // 4) // base * base)
    tb = min(tb, tb_pipe)

    # Prefer an even number of grid steps so v7x's two TensorCores stay balanced.
    steps = pl.cdiv(n_series, tb)
    if steps > 1 and steps % 2 == 1 and tb > base:
        tb_try = tb - base
        if pl.cdiv(n_series, tb_try) % 2 == 0:
            tb = tb_try
    return tb


def _en_embedding_kernel(x_ref, w_ref, pe_ref, glb_ref, out_ref):
    # x_ref  : (TB*num_patches, patch_len)   flattened patch rows for TB series
    # w_ref  : (patch_len, d_model)          value-embedding weight (VMEM-resident)
    # pe_ref : (num_patches, d_model)        positional embedding (VMEM-resident)
    # glb_ref: (TB, 1, d_model)              per-series global token
    # out_ref: (TB, num_patches+1, d_model)  final layout, written in place
    tb, np1, d_model = out_ref.shape
    num_patches = np1 - 1
    emb = jnp.dot(x_ref[...], w_ref[...], preferred_element_type=jnp.float32)
    emb = emb.reshape(tb, num_patches, d_model) + pe_ref[...][None, :, :]
    out_ref[:, :num_patches, :] = emb.astype(out_ref.dtype)
    out_ref[:, num_patches:, :] = glb_ref[...].astype(out_ref.dtype)


def en_embedding(x, w, glb_token, patch_len):
    """x: (B, n_vars, seq_len); w: (patch_len, d_model); glb_token: (1, n_vars, 1, d_model).

    Returns (out, n_vars) with out: (B * n_vars, num_patches + 1, d_model).
    """
    B, n_vars, seq_len = x.shape
    d_model = w.shape[1]
    num_patches = seq_len // patch_len  # unfold(size=patch_len, step=patch_len)
    n_series = B * n_vars
    R = n_series * num_patches

    # --- wrapper-side glue (tiny, layout only) ---------------------------------
    x2d = x[:, :, : num_patches * patch_len].reshape(R, patch_len)
    w_k = w.astype(x.dtype)
    pe = _sinusoidal_pe(num_patches, d_model, jnp.float32)
    glb3 = jnp.broadcast_to(
        glb_token.reshape(1, n_vars, 1, d_model), (B, n_vars, 1, d_model)
    ).reshape(n_series, 1, d_model).astype(x.dtype)

    budget, vmem_limit = _vmem_budget()
    TB = _choose_block_series(
        n_series, num_patches, patch_len, d_model, x.dtype.itemsize, budget
    )
    TR = TB * num_patches
    grid = (pl.cdiv(n_series, TB),)

    itemsize = x.dtype.itemsize
    cost = pl.CostEstimate(
        flops=2 * R * patch_len * d_model,
        transcendentals=0,
        bytes_accessed=(
            R * patch_len * itemsize                     # x
            + patch_len * d_model * itemsize             # w
            + num_patches * d_model * 4                  # pe
            + n_series * d_model * itemsize              # glb
            + n_series * (num_patches + 1) * d_model * itemsize  # out
        ),
    )

    out = pl.pallas_call(
        _en_embedding_kernel,
        out_shape=jax.ShapeDtypeStruct((n_series, num_patches + 1, d_model), x.dtype),
        grid_spec=pltpu.PrefetchScalarGridSpec(
            num_scalar_prefetch=0,
            grid=grid,
            in_specs=[
                pl.BlockSpec((TR, patch_len), lambda i: (i, 0)),
                pl.BlockSpec((patch_len, d_model), lambda i: (0, 0)),
                pl.BlockSpec((num_patches, d_model), lambda i: (0, 0)),
                pl.BlockSpec((TB, 1, d_model), lambda i: (i, 0, 0)),
            ],
            out_specs=pl.BlockSpec(
                (TB, num_patches + 1, d_model), lambda i: (i, 0, 0)
            ),
        ),
        compiler_params=pltpu.CompilerParams(
            dimension_semantics=("parallel",),
            vmem_limit_bytes=vmem_limit,
        ),
        cost_estimate=cost,
    )(x2d, w_k, pe, glb3)

    # TODO(synk): nn.Dropout treated as inference-mode identity (no training RNG here).
    return out, n_vars


def _reference(x, w, glb_token, patch_len):
    B, n_vars, L = x.shape
    d_model = w.shape[1]
    num_patches = L // patch_len
    xp = x[:, :, : num_patches * patch_len].reshape(B, n_vars, num_patches, patch_len)
    emb = jnp.einsum("bvnp,pd->bvnd", xp, w) + _sinusoidal_pe(num_patches, d_model)
    glb = jnp.broadcast_to(glb_token, (B, n_vars, 1, d_model))
    out = jnp.concatenate([emb, glb], axis=2)
    return out.reshape(B * n_vars, num_patches + 1, d_model)


if __name__ == "__main__":
    # Small, module-consistent shapes.
    B, n_vars, seq_len = 2, 4, 16
    patch_len, d_model = 8, 32

    key = jax.random.PRNGKey(0)
    kx, kw, kg = jax.random.split(key, 3)

    x = jax.random.normal(kx, (B, n_vars, seq_len), dtype=jnp.float32)
    # nn.Linear(patch_len, d_model, bias=False): torch weight is (d_model, patch_len);
    # we store the transposed (patch_len, d_model) for y = x @ W^T.
    w = jax.random.normal(kw, (patch_len, d_model), dtype=jnp.float32) * (
        1.0 / math.sqrt(patch_len)
    )
    glb_token = jax.random.normal(kg, (1, n_vars, 1, d_model), dtype=jnp.float32)

    out, nv = en_embedding(x, w, glb_token, patch_len)
    out = jax.block_until_ready(out)

    ref = _reference(x, w, glb_token, patch_len)
    assert out.shape == (B * n_vars, seq_len // patch_len + 1, d_model)
    assert nv == n_vars
    assert jnp.allclose(out, ref, atol=1e-5, rtol=1e-5)

    print("KERNEL_OK")
</pallas_src>

<mosaic_0001>
module attributes {stable_mosaic.version = 11 : i64} {
  func.func @_en_embedding_kernel(%arg0: i32, %arg1: memref<8x8xf32, #tpu.memory_space<vmem>>, %arg2: memref<8x32xf32, #tpu.memory_space<vmem>>, %arg3: memref<2x32xf32, #tpu.memory_space<vmem>>, %arg4: memref<4x1x32xf32, #tpu.memory_space<vmem>>, %arg5: memref<4x3x32xf32, #tpu.memory_space<vmem>>) attributes {dimension_semantics = [#tpu.dimension_semantics<parallel>], iteration_bounds = array<i64: 2>, scalar_prefetch = 0 : i64, scratch_operands = 0 : i64, tpu.core_type = #tpu.core_type<tc>, window_params = [{transform_indices = @transform_0, window_bounds = array<i64: 8, 8>}, {pipeline_mode = #tpu.pipeline_mode<synchronous>, transform_indices = @transform_1, window_bounds = array<i64: 8, 32>}, {pipeline_mode = #tpu.pipeline_mode<synchronous>, transform_indices = @transform_2, window_bounds = array<i64: 2, 32>}, {transform_indices = @transform_3, window_bounds = array<i64: 4, 1, 32>}, {transform_indices = @transform_4, window_bounds = array<i64: 4, 3, 32>}]} {
    %c0 = arith.constant 0 : index
    %c0_0 = arith.constant 0 : index
    %0 = vector.load %arg1[%c0, %c0_0] : memref<8x8xf32, #tpu.memory_space<vmem>>, vector<8x8xf32>
    %c0_1 = arith.constant 0 : index
    %c0_2 = arith.constant 0 : index
    %1 = vector.load %arg2[%c0_1, %c0_2] : memref<8x32xf32, #tpu.memory_space<vmem>>, vector<8x32xf32>
    %cst = arith.constant dense<0.000000e+00> : vector<8x32xf32>
    %2 = tpu.matmul %0, %1, %cst {dimension_numbers = #tpu.dot_dimension_numbers<[1], [0], [0], [1], [0, 0, 1, 1], [], []>} : vector<8x8xf32>, vector<8x32xf32>, vector<8x32xf32> -> vector<8x32xf32>
    %3 = vector.shape_cast %2 : vector<8x32xf32> to vector<4x2x32xf32>
    %c0_3 = arith.constant 0 : index
    %c0_4 = arith.constant 0 : index
    %4 = vector.load %arg3[%c0_3, %c0_4] : memref<2x32xf32, #tpu.memory_space<vmem>>, vector<2x32xf32>
    %5 = vector.shape_cast %4 : vector<2x32xf32> to vector<1x2x32xf32>
    %6 = vector.broadcast %5 : vector<1x2x32xf32> to vector<4x2x32xf32>
    %7 = arith.addf %3, %6 : vector<4x2x32xf32>
    %c0_5 = arith.constant 0 : index
    %c0_6 = arith.constant 0 : index
    %c0_7 = arith.constant 0 : index
    %8 = vector.load %arg5[%c0_5, %c0_6, %c0_7] : memref<4x3x32xf32, #tpu.memory_space<vmem>>, vector<4x2x32xf32>
    tpu.vector_store %arg5[%c0_5, %c0_6, %c0_7], %7 {strides = array<i32>} : memref<4x3x32xf32, #tpu.memory_space<vmem>>, vector<4x2x32xf32>,
    %c0_8 = arith.constant 0 : index
    %c0_9 = arith.constant 0 : index
    %c0_10 = arith.constant 0 : index
    %9 = vector.load %arg4[%c0_8, %c0_9, %c0_10] : memref<4x1x32xf32, #tpu.memory_space<vmem>>, vector<4x1x32xf32>
    %c0_11 = arith.constant 0 : index
    %c2 = arith.constant 2 : index
    %c0_12 = arith.constant 0 : index
    %10 = vector.load %arg5[%c0_11, %c2, %c0_12] : memref<4x3x32xf32, #tpu.memory_space<vmem>>, vector<4x1x32xf32>
    tpu.vector_store %arg5[%c0_11, %c2, %c0_12], %9 {strides = array<i32>} : memref<4x3x32xf32, #tpu.memory_space<vmem>>, vector<4x1x32xf32>,
    return
  }
  func.func @transform_0(%arg0: i32) -> (i32, i32) {
    %c0_i32 = arith.constant 0 : i32
    %c0_i32_0 = arith.constant 0 : i32
    return %arg0, %c0_i32 : i32, i32
  }
  func.func @transform_1(%arg0: i32) -> (i32, i32) {
    %c0_i32 = arith.constant 0 : i32
    %c0_i32_0 = arith.constant 0 : i32
    %c0_i32_1 = arith.constant 0 : i32
    return %c0_i32, %c0_i32_0 : i32, i32
  }
  func.func @transform_2(%arg0: i32) -> (i32, i32) {
    %c0_i32 = arith.constant 0 : i32
    %c0_i32_0 = arith.constant 0 : i32
    %c0_i32_1 = arith.constant 0 : i32
    return %c0_i32, %c0_i32_0 : i32, i32
  }
  func.func @transform_3(%arg0: i32) -> (i32, i32, i32) {
    %c0_i32 = arith.constant 0 : i32
    %c0_i32_0 = arith.constant 0 : i32
    %c0_i32_1 = arith.constant 0 : i32
    return %arg0, %c0_i32, %c0_i32_0 : i32, i32, i32
  }
  func.func @transform_4(%arg0: i32) -> (i32, i32, i32) {
    %c0_i32 = arith.constant 0 : i32
    %c0_i32_0 = arith.constant 0 : i32
    %c0_i32_1 = arith.constant 0 : i32
    return %arg0, %c0_i32, %c0_i32_0 : i32, i32, i32
  }
}

</mosaic_0001>

<bundles_post_ra>
// kernel: tpu_custom_call.1
= control target key start
LH: loop header
LB: loop body
LE: loop exit
PB: predicated region body
PF: predicated region fallthrough
CT: control target
= control target key end

     0   :  { %s463_s15 = smov 0   ;;  %s499_s0 = inlined_call_operand.vmem [shape: f32[16,8], index: 0, kind: input, shape index: {}]   ;;  %s500_s1 = inlined_call_operand.vmem [shape: f32[8,32], index: 1, kind: input, shape index: {}]   ;;  %s501_s2 = inlined_call_operand.vmem [shape: f32[2,32], index: 2, kind: input, shape index: {}]   ;;  %s502_s3 = inlined_call_operand.vmem [shape: f32[8,1,32], index: 3, kind: input, shape index: {}]   ;;  %s503_s4 = inlined_call_operand.vmem [shape: f32[8,3,32], index: 4, kind: output, shape index: {}]  }
   0x1 LB: > { %s397_s16 = sadd.s32 4294967295, %s433_s15   ;;  %p401_p0 = scmp.ge.s32.totalorder %s433_s15, 1  ;;  %s433_s15 = sphi %s463_s15, %s14_s15  }
   0x2   : > { %p171_p1 = scmp.lt.s32.totalorder %s433_s15, 3 }
   0x4   : > { %p172_p2 = pnand %p401_p0, %p171_p1 }
   0x5   : > { %p200_p3 = scmp.lt.s32.totalorder (!%p172_p2), %s397_s16, 1  ;;  %s403_s24 = sshll.u32 (!%p172_p2), %s397_s16, 2 }
   0x6   : > { %175 = sbr.rel (%p172_p2) target bundleno = 218 (0xda), region = 36  ;;  %p205_p4 = scmp.lt.s32.totalorder (!%p172_p2), %s403_s24, 7 }
   0xb   : > { %v216_v0 = vld [vmem:[%s500_s1] sm:$0xff]  ;;  %v435_v1 = vmov 0.0   ;;  %vm436_vm0 = vmmov 0   ;;  %s201_s19 = scalar_select %p200_p3, %s397_s16, 1  ;;  %vm217_vm1 = vcmask 64512   ;;  %vm327_vm2 = vcmask 253952  }
   0xc   : > { %411 = vmatprep.subr.mxu0 %v435_v1  ;;  %413 = vmatprep.mubr.msk.f32.mxu0 %vm436_vm0, %v435_v1  ;;  %s505_s24 = smov (!%p205_p4, %s403_s24), 7  ;;  %v437_v7 = vmov 1983009808   ;;  %v296_v9 = vlaneseq  ;;  %v313_v14 = vld [vmem:[%s501_s2] sm:$0x3]  ;;  %vm318_vm3 = vcmask 254976  }
   0xd   : > { %412 = vmatpush3.msra.mxu0 %v216_v0  ;;  %s402_s20 = sshll.u32 %s201_s19, 3  ;;  %s405_s25 = sshll.u32 %s505_s24, 2  ;;  %v294_v8 = vunpack.c.l.s4 %v437_v7 }
   0xe   : > { %s203_s23 = scalar_lea.vmem %s499_s0, %s402_s20  ;;  %s207_s28 = scalar_lea.vmem %s502_s3, %s505_s24  ;;  %v297_v11 = vshrl.u32 %v296_v9, 7 }
   0xf   : > { %v215_v2 = vld [vmem:[%s203_s23] sm:$0xff]  ;;  %s483_s5 = scalar_lea.vmem %s503_s4, %s405_s25  ;;  %v295_v10 = vunpack.c.0.s8 %v294_v8 }
  0x10   : > { %414 = vmatmul.mubr.msk.f32.vlgmr.msra.gmra.mxu0 %vm217_vm1, %v215_v2  ;;  %v323_v3 = vld [vmem:[%s207_s28] sm:$0x1]  ;;  %v324_v4 = vld [vmem:[%s207_s28 + $0x1] sm:$0x1]  ;;  %v325_v5 = vld [vmem:[%s207_s28 + $0x2] sm:$0x1] }
  0x11   : > { %328 = vst.msk [vmem:[%s483_s5 + $0x2] sm:$0x1] %vm327_vm2, %v323_v3  ;;  %329 = vst.msk [vmem:[%s483_s5 + $0x6] sm:$0x1] %vm327_vm2, %v324_v4  ;;  %v326_v6 = vld [vmem:[%s207_s28 + $0x3] sm:$0x1]  ;;  %v298_v12 = vsub.s32 %v295_v10, %v297_v11 }
  0x12   : > { %330 = vst.msk [vmem:[%s483_s5 + $0xa] sm:$0x1] %vm327_vm2, %v325_v5  ;;  %331 = vst.msk [vmem:[%s483_s5 + $0xe] sm:$0x1] %vm327_vm2, %v326_v6 }
  0xd0   : > { %v287_v13 = vpop.f32.mrf.mxu0 }
  0xd1   : > { %v292_v15 = vcombine.high %v287_v13, %v287_v13  ;;  %v299_v16 = vrot.slane %v287_v13, %v298_v12 }
  0xd2   : > { %v415_v17 = vpop.f32.mrf.mxu0 }
  0xd3   : > { %v306_v18 = vrot.slane %v292_v15, %v298_v12  ;;  %v307_v19 = vcombine.high %v299_v16, %v299_v16  ;;  %v314_v20 = vadd.f32 %v313_v14, %v299_v16 }
  0xd5   : > { %v308_v21 = vcombine.high %v306_v18, %v306_v18  ;;  %v315_v22 = vadd.f32 %v313_v14, %v307_v19  ;;  %v316_v23 = vadd.f32 %v313_v14, %v306_v18  ;;  %319 = vst.msk [vmem:[%s483_s5] sm:$0x3] %vm318_vm3, %v314_v20 }
  0xd7   : > { %v317_v24 = vadd.f32 %v313_v14, %v308_v21  ;;  %320 = vst.msk [vmem:[%s483_s5 + $0x4] sm:$0x3] %vm318_vm3, %v315_v22  ;;  %321 = vst.msk [vmem:[%s483_s5 + $0x8] sm:$0x3] %vm318_vm3, %v316_v23 }
  0xd9   : > { %322 = vst.msk [vmem:[%s483_s5 + $0xc] sm:$0x3] %vm318_vm3, %v317_v24 }
  0xda PF: > { %s14_s15 = sadd.s32 1, %s433_s15  }
  0xdb   : > { %p11_p5 = scmp.ge.s32.totalorder %s14_s15, 4  }
  0xdd   :  { %13 = sbr.rel (!%p11_p5) target bundleno = 1 (0x1), region = 69 }

</bundles_post_ra>
